<compile_context>
chip_gen: v5e
topology: v5e:2x2
jax: 0.10.0
libtpu: 0.0.40
codegen_flags: <defaults>
</compile_context>

<pallas_src>
import functools

import jax
import jax.numpy as jnp
from jax.experimental import pallas as pl
from jax.experimental.pallas import tpu as pltpu


def _round_up(x, m):
    return (x + m - 1) // m * m


def _vmem_capacity_bytes():
    """Physical VMEM per TensorCore; conservative 64 MiB (v7x) if undetectable."""
    try:
        return int(pltpu.get_tpu_info().vmem_capacity_bytes)
    except Exception:
        return 64 * 1024 * 1024


def _lane_multiple():
    """MXU-friendly padding multiple for the N/K matmul dims."""
    try:
        kind = jax.devices()[0].device_kind.lower()
    except Exception:
        return 128
    # v2-v5 MXUs use 128x128 tiles; v6e/v7x are 2x256x256.
    if any(tag in kind for tag in ("v2", "v3", "v4", "v5")):
        return 128
    return 256


def _const_spec(shape, single_buffer):
    """BlockSpec for an operand whose block never changes across the grid."""
    index_map = lambda *_: (0,) * len(shape)
    if single_buffer:
        try:
            return pl.BlockSpec(shape, index_map, pipeline_mode=pl.Buffered(1))
        except Exception:
            pass
    return pl.BlockSpec(shape, index_map)


# --------------------------------------------------------------------------- #
# Kernels                                                                     #
# --------------------------------------------------------------------------- #
def _fused_kernel(x_ref, w1_ref, b1_ref, w2_ref, b2_ref, o_ref):
    # Encoder: Linear + ReLU (MXU matmul, f32 accumulation).
    h = jnp.dot(x_ref[...], w1_ref[...], preferred_element_type=jnp.float32)
    h = jnp.maximum(h + b1_ref[...], 0.0)
    # Decoder: Linear (second MXU matmul, f32 accumulation).
    y = jnp.dot(h.astype(w2_ref.dtype), w2_ref[...],
                preferred_element_type=jnp.float32)
    o_ref[...] = (y + b2_ref[...]).astype(o_ref.dtype)


def _fused_kernel_htiled(x_ref, w1_ref, b1_ref, w2_ref, b2_ref, o_ref, acc_ref):
    # Grid = (batch tiles, hidden-dim chunks). ReLU is elementwise per hidden
    # unit, so chunking H and accumulating the decoder matmul in a resident
    # f32 VMEM accumulator is exact.
    k = pl.program_id(1)

    @pl.when(k == 0)
    def _():
        acc_ref[...] = jnp.zeros_like(acc_ref)

    h = jnp.dot(x_ref[...], w1_ref[...], preferred_element_type=jnp.float32)
    h = jnp.maximum(h + b1_ref[...], 0.0)
    acc_ref[...] += jnp.dot(h.astype(w2_ref.dtype), w2_ref[...],
                            preferred_element_type=jnp.float32)

    @pl.when(k == pl.num_programs(1) - 1)
    def _():
        o_ref[...] = (acc_ref[...] + b2_ref[...]).astype(o_ref.dtype)


# --------------------------------------------------------------------------- #
# Forward                                                                     #
# --------------------------------------------------------------------------- #
@functools.partial(
    jax.jit,
    static_argnames=("dims", "tile_b", "compute_dtype", "single_buffer"))
def _forward_impl(x, w1p, b1p, w2p, b2p, *, dims, tile_b, compute_dtype,
                  single_buffer):
    D_in, H, D_out, Dp_in, Hp, Dp_out = dims
    B = x.shape[0]
    out_dtype = x.dtype
    wdt = jnp.dtype(compute_dtype).itemsize
    odt = jnp.dtype(out_dtype).itemsize

    vmem_cap = _vmem_capacity_bytes()
    headroom = 4 * 1024 * 1024
    weight_bytes = (Dp_in + Dp_out) * Hp * wdt
    # Keep both weight matrices resident only while they stay well under VMEM
    # (~24 MiB on v7x, ~48 MiB on v5e/v6e); otherwise tile the hidden dim.
    weight_budget = (vmem_cap * 3) // 8
    resident = weight_bytes <= weight_budget

    if resident:
        tile_h = Hp
    else:
        n128 = Hp // 128
        tile_h = 128
        for k in range(n128, 0, -1):   # largest 128-multiple divisor that fits
            if n128 % k == 0 and \
               2 * (Dp_in + Dp_out) * (128 * k) * wdt <= weight_budget:
                tile_h = 128 * k
                break
    nh = Hp // tile_h

    # Batch tile: multiple of 8 sublanes, default 512 rows, >= 2 grid steps
    # whenever B allows (so both v7x TensorCores get work), shrunk if the
    # VMEM estimate would exceed capacity.
    tb = 512 if tile_b is None else int(tile_b)
    tb = max(8, _round_up(min(tb, _round_up(B, 8)), 8))
    if B > 8 and _round_up(B, tb) // tb < 2:
        tb = max(8, _round_up((B + 1) // 2, 8))

    def vmem_est(tb_):
        n_wbuf = 1 if (resident and single_buffer) else 2
        return (2 * tb_ * Dp_in * wdt                       # x tiles (2 bufs)
                + 2 * tb_ * Dp_out * odt                    # out tiles (2 bufs)
                + n_wbuf * (Dp_in + Dp_out) * tile_h * wdt  # weight tiles
                + 2 * (tile_h + Dp_out) * 4                 # bias tiles (f32)
                + tb_ * tile_h * 4                          # f32 h intermediate
                + 2 * tb_ * Dp_out * 4)                     # f32 y / accumulator

    while tb > 8 and vmem_est(tb) > vmem_cap - headroom:
        tb = max(8, _round_up(tb // 2, 8))

    Bp = _round_up(B, tb)
    nb = Bp // tb

    vmem_limit = int(min(max(32 * 1024 * 1024, (vmem_est(tb) * 5) // 4),
                         vmem_cap - headroom))

    # Lane-dense zero padding keeps the math exact (padded H cols give
    # relu(0)=0 and multiply zero rows of W2; padded batch rows are sliced off).
    xp = x
    if Bp != B or Dp_in != D_in:
        xp = jnp.pad(x, ((0, Bp - B), (0, Dp_in - D_in)))
    if xp.dtype != jnp.dtype(compute_dtype):
        xp = xp.astype(compute_dtype)

    cost = pl.CostEstimate(
        flops=2 * Bp * Hp * (Dp_in + Dp_out),
        transcendentals=0,
        bytes_accessed=(Bp * Dp_in * wdt + Bp * Dp_out * odt + weight_bytes
                        + (Hp + Dp_out) * 4))

    if resident:
        out_p = pl.pallas_call(
            _fused_kernel,
            out_shape=jax.ShapeDtypeStruct((Bp, Dp_out), out_dtype),
            grid_spec=pl.GridSpec(
                grid=(nb,),
                in_specs=[
                    pl.BlockSpec((tb, Dp_in), lambda i: (i, 0)),   # x tile
                    _const_spec((Dp_in, Hp), single_buffer),       # W1 resident
                    _const_spec((1, Hp), single_buffer),           # b1
                    _const_spec((Hp, Dp_out), single_buffer),      # W2 resident
                    _const_spec((1, Dp_out), single_buffer),       # b2
                ],
                out_specs=pl.BlockSpec((tb, Dp_out), lambda i: (i, 0)),
            ),
            compiler_params=pltpu.CompilerParams(
                dimension_semantics=("parallel",),
                vmem_limit_bytes=vmem_limit),
            cost_estimate=cost,
        )(xp, w1p, b1p, w2p, b2p)
    else:
        out_p = pl.pallas_call(
            _fused_kernel_htiled,
            out_shape=jax.ShapeDtypeStruct((Bp, Dp_out), out_dtype),
            grid_spec=pltpu.PrefetchScalarGridSpec(
                num_scalar_prefetch=0,
                grid=(nb, nh),
                in_specs=[
                    pl.BlockSpec((tb, Dp_in), lambda i, k: (i, 0)),     # x tile
                    pl.BlockSpec((Dp_in, tile_h), lambda i, k: (0, k)), # W1 chunk
                    pl.BlockSpec((1, tile_h), lambda i, k: (0, k)),     # b1 chunk
                    pl.BlockSpec((tile_h, Dp_out), lambda i, k: (k, 0)),# W2 chunk
                    _const_spec((1, Dp_out), single_buffer),            # b2
                ],
                out_specs=pl.BlockSpec((tb, Dp_out), lambda i, k: (i, 0)),
                scratch_shapes=[pltpu.VMEM((tb, Dp_out), jnp.float32)],
            ),
            compiler_params=pltpu.CompilerParams(
                dimension_semantics=("parallel", "arbitrary"),
                vmem_limit_bytes=vmem_limit),
            cost_estimate=cost,
        )(xp, w1p, b1p, w2p, b2p)

    # Slice away batch / lane padding.
    return out_p[:B, :D_out]


def _prepare_params(w1, b1, w2, b2, compute_dtype, lane):
    """Pad/cast parameters once (hoisted out of the per-call path)."""
    D_in, H = w1.shape
    D_out = w2.shape[1]
    Dp_in = _round_up(D_in, 128)
    Hp = _round_up(H, lane)
    Dp_out = _round_up(D_out, lane)

    def pad2(a, rows, cols, dtype):
        pr, pc = rows - a.shape[0], cols - a.shape[1]
        if pr or pc:
            a = jnp.pad(a, ((0, pr), (0, pc)))
        return a.astype(dtype)

    w1p = pad2(w1, Dp_in, Hp, compute_dtype)
    w2p = pad2(w2, Hp, Dp_out, compute_dtype)
    b1p = pad2(jnp.reshape(b1, (1, H)), 1, Hp, jnp.float32)
    b2p = pad2(jnp.reshape(b2, (1, D_out)), 1, Dp_out, jnp.float32)
    dims = (D_in, H, D_out, Dp_in, Hp, Dp_out)
    return (w1p, b1p, w2p, b2p), dims


def make_submodel_trans(w1, b1, w2, b2, *, compute_dtype=jnp.bfloat16,
                        tile_b=None):
    """Build a fused encoder->decoder forward: y = relu(x @ W1 + b1) @ W2 + b2.

    Weights are stored [in_features, out_features] (transpose of torch Linear).
    Parameter padding/casting happens once here, not per call. With the
    default compute_dtype=bfloat16 results will not bit-match an f32
    reference (MXU accumulation stays f32); pass compute_dtype=jnp.float32
    for exact f32 math.
    """
    params, dims = _prepare_params(w1, b1, w2, b2, compute_dtype,
                                   _lane_multiple())
    state = {"single_buffer": True}

    def forward(x):
        try:
            return _forward_impl(x, *params, dims=dims, tile_b=tile_b,
                                 compute_dtype=compute_dtype,
                                 single_buffer=state["single_buffer"])
        except Exception:
            if not state["single_buffer"]:
                raise
            # pl.Buffered(1) on the resident weights was refused by this
            # jax/Mosaic version -> fall back to default double buffering.
            state["single_buffer"] = False
            return _forward_impl(x, *params, dims=dims, tile_b=tile_b,
                                 compute_dtype=compute_dtype,
                                 single_buffer=False)

    return forward


def submodel_trans_forward(x, w1, b1, w2, b2, *, compute_dtype=jnp.bfloat16,
                           tile_b=None):
    """One-shot convenience wrapper (prefer make_submodel_trans for reuse)."""
    return make_submodel_trans(w1, b1, w2, b2, compute_dtype=compute_dtype,
                               tile_b=tile_b)(x)


def _init_params(key, d_in, hidden, d_out, dtype=jnp.float32):
    k1, k2, k3, k4 = jax.random.split(key, 4)
    w1 = jax.random.normal(k1, (d_in, hidden), dtype) * (1.0 / jnp.sqrt(d_in))
    b1 = jax.random.normal(k2, (1, hidden), dtype) * 0.01
    w2 = jax.random.normal(k3, (hidden, d_out), dtype) * (1.0 / jnp.sqrt(hidden))
    b2 = jax.random.normal(k4, (1, d_out), dtype) * 0.01
    return w1, b1, w2, b2


if __name__ == "__main__":
    # Small shapes consistent with the forward: batch=8, in=32, hidden=64, out=32.
    # (Kernel pads these to lane-dense 128/256-multiples internally; at this
    # toy size the grid collapses to a single iteration.)
    B, D_IN, HID, D_OUT = 8, 32, 64, 32

    key = jax.random.PRNGKey(0)
    kx, kp = jax.random.split(key)
    x = jax.random.normal(kx, (B, D_IN), jnp.float32)
    w1, b1, w2, b2 = _init_params(kp, D_IN, HID, D_OUT)

    # Reference in plain JAX (same math as the PyTorch Linear/ReLU composition).
    ref = jnp.maximum(x @ w1 + b1, 0.0) @ w2 + b2

    # Exact f32 path.
    fwd_f32 = make_submodel_trans(w1, b1, w2, b2, compute_dtype=jnp.float32)
    out_f32 = jax.block_until_ready(fwd_f32(x))
    assert out_f32.shape == (B, D_OUT)
    assert jnp.allclose(out_f32, ref, atol=1e-4, rtol=1e-4)

    # Default bf16-operand / f32-accumulation path (looser tolerance).
    fwd_bf16 = make_submodel_trans(w1, b1, w2, b2)
    out_bf16 = jax.block_until_ready(fwd_bf16(x))
    assert out_bf16.shape == (B, D_OUT)
    assert jnp.allclose(out_bf16, ref, atol=5e-2, rtol=5e-2)

    print("KERNEL_OK")
</pallas_src>

<mosaic_0001>
module attributes {stable_mosaic.version = 11 : i64} {
  func.func @_fused_kernel(%arg0: i32, %arg1: memref<8x128xf32, #tpu.memory_space<vmem>>, %arg2: memref<128x256xf32, #tpu.memory_space<vmem>>, %arg3: memref<1x256xf32, #tpu.memory_space<vmem>>, %arg4: memref<256x256xf32, #tpu.memory_space<vmem>>, %arg5: memref<1x256xf32, #tpu.memory_space<vmem>>, %arg6: memref<8x256xf32, #tpu.memory_space<vmem>>) attributes {dimension_semantics = [#tpu.dimension_semantics<parallel>], iteration_bounds = array<i64: 1>, scalar_prefetch = 0 : i64, scratch_operands = 0 : i64, tpu.core_type = #tpu.core_type<tc>, window_params = [{transform_indices = @transform_0, window_bounds = array<i64: 8, 128>}, {pipeline_mode = #tpu.pipeline_mode<synchronous>, transform_indices = @transform_1, window_bounds = array<i64: 128, 256>}, {pipeline_mode = #tpu.pipeline_mode<synchronous>, transform_indices = @transform_2, window_bounds = array<i64: 1, 256>}, {pipeline_mode = #tpu.pipeline_mode<synchronous>, transform_indices = @transform_3, window_bounds = array<i64: 256, 256>}, {pipeline_mode = #tpu.pipeline_mode<synchronous>, transform_indices = @transform_4, window_bounds = array<i64: 1, 256>}, {transform_indices = @transform_5, window_bounds = array<i64: 8, 256>}]} {
    %c0 = arith.constant 0 : index
    %c0_0 = arith.constant 0 : index
    %0 = vector.load %arg1[%c0, %c0_0] : memref<8x128xf32, #tpu.memory_space<vmem>>, vector<8x128xf32>
    %c0_1 = arith.constant 0 : index
    %c0_2 = arith.constant 0 : index
    %1 = vector.load %arg2[%c0_1, %c0_2] : memref<128x256xf32, #tpu.memory_space<vmem>>, vector<128x256xf32>
    %cst = arith.constant dense<0.000000e+00> : vector<8x256xf32>
    %2 = tpu.matmul %0, %1, %cst {dimension_numbers = #tpu.dot_dimension_numbers<[1], [0], [0], [1], [0, 0, 1, 1], [], []>} : vector<8x128xf32>, vector<128x256xf32>, vector<8x256xf32> -> vector<8x256xf32>
    %c0_3 = arith.constant 0 : index
    %c0_4 = arith.constant 0 : index
    %3 = vector.load %arg3[%c0_3, %c0_4] : memref<1x256xf32, #tpu.memory_space<vmem>>, vector<1x256xf32>
    %4 = vector.broadcast %3 : vector<1x256xf32> to vector<8x256xf32>
    %5 = arith.addf %2, %4 : vector<8x256xf32>
    %cst_5 = arith.constant 0.000000e+00 : f32
    %6 = vector.broadcast %cst_5 : f32 to vector<8x256xf32>
    %7 = arith.maximumf %5, %6 : vector<8x256xf32>
    %c0_6 = arith.constant 0 : index
    %c0_7 = arith.constant 0 : index
    %8 = vector.load %arg4[%c0_6, %c0_7] : memref<256x256xf32, #tpu.memory_space<vmem>>, vector<256x256xf32>
    %cst_8 = arith.constant dense<0.000000e+00> : vector<8x256xf32>
    %9 = tpu.matmul %7, %8, %cst_8 {dimension_numbers = #tpu.dot_dimension_numbers<[1], [0], [0], [1], [0, 0, 1, 1], [], []>} : vector<8x256xf32>, vector<256x256xf32>, vector<8x256xf32> -> vector<8x256xf32>
    %c0_9 = arith.constant 0 : index
    %c0_10 = arith.constant 0 : index
    %10 = vector.load %arg5[%c0_9, %c0_10] : memref<1x256xf32, #tpu.memory_space<vmem>>, vector<1x256xf32>
    %11 = vector.broadcast %10 : vector<1x256xf32> to vector<8x256xf32>
    %12 = arith.addf %9, %11 : vector<8x256xf32>
    %c0_11 = arith.constant 0 : index
    %c0_12 = arith.constant 0 : index
    %13 = vector.load %arg6[%c0_11, %c0_12] : memref<8x256xf32, #tpu.memory_space<vmem>>, vector<8x256xf32>
    tpu.vector_store %arg6[%c0_11, %c0_12], %12 {strides = array<i32>} : memref<8x256xf32, #tpu.memory_space<vmem>>, vector<8x256xf32>,
    return
  }
  func.func @transform_0(%arg0: i32) -> (i32, i32) {
    %c0_i32 = arith.constant 0 : i32
    %c0_i32_0 = arith.constant 0 : i32
    return %arg0, %c0_i32 : i32, i32
  }
  func.func @transform_1(%arg0: i32) -> (i32, i32) {
    %c0_i32 = arith.constant 0 : i32
    %c0_i32_0 = arith.constant 0 : i32
    %c0_i32_1 = arith.constant 0 : i32
    return %c0_i32, %c0_i32_0 : i32, i32
  }
  func.func @transform_2(%arg0: i32) -> (i32, i32) {
    %c0_i32 = arith.constant 0 : i32
    %c0_i32_0 = arith.constant 0 : i32
    %c0_i32_1 = arith.constant 0 : i32
    return %c0_i32, %c0_i32_0 : i32, i32
  }
  func.func @transform_3(%arg0: i32) -> (i32, i32) {
    %c0_i32 = arith.constant 0 : i32
    %c0_i32_0 = arith.constant 0 : i32
    %c0_i32_1 = arith.constant 0 : i32
    return %c0_i32, %c0_i32_0 : i32, i32
  }
  func.func @transform_4(%arg0: i32) -> (i32, i32) {
    %c0_i32 = arith.constant 0 : i32
    %c0_i32_0 = arith.constant 0 : i32
    %c0_i32_1 = arith.constant 0 : i32
    return %c0_i32, %c0_i32_0 : i32, i32
  }
  func.func @transform_5(%arg0: i32) -> (i32, i32) {
    %c0_i32 = arith.constant 0 : i32
    %c0_i32_0 = arith.constant 0 : i32
    return %arg0, %c0_i32 : i32, i32
  }
}

module attributes {stable_mosaic.version = 11 : i64} {
  func.func @_fused_kernel(%arg0: i32, %arg1: memref<8x128xf32, #tpu.memory_space<vmem>>, %arg2: memref<128x256xf32, #tpu.memory_space<vmem>>, %arg3: memref<1x256xf32, #tpu.memory_space<vmem>>, %arg4: memref<256x256xf32, #tpu.memory_space<vmem>>, %arg5: memref<1x256xf32, #tpu.memory_space<vmem>>, %arg6: memref<8x256xf32, #tpu.memory_space<vmem>>) attributes {dimension_semantics = [#tpu.dimension_semantics<parallel>], iteration_bounds = array<i64: 1>, scalar_prefetch = 0 : i64, scratch_operands = 0 : i64, tpu.core_type = #tpu.core_type<tc>, window_params = [{transform_indices = @transform_0, window_bounds = array<i64: 8, 128>}, {pipeline_mode = #tpu.pipeline_mode<synchronous>, transform_indices = @transform_1, window_bounds = array<i64: 128, 256>}, {pipeline_mode = #tpu.pipeline_mode<synchronous>, transform_indices = @transform_2, window_bounds = array<i64: 1, 256>}, {pipeline_mode = #tpu.pipeline_mode<synchronous>, transform_indices = @transform_3, window_bounds = array<i64: 256, 256>}, {pipeline_mode = #tpu.pipeline_mode<synchronous>, transform_indices = @transform_4, window_bounds = array<i64: 1, 256>}, {transform_indices = @transform_5, window_bounds = array<i64: 8, 256>}]} {
    %c0 = arith.constant 0 : index
    %c0_0 = arith.constant 0 : index
    %0 = vector.load %arg1[%c0, %c0_0] : memref<8x128xf32, #tpu.memory_space<vmem>>, vector<8x128xf32>
    %c0_1 = arith.constant 0 : index
    %c0_2 = arith.constant 0 : index
    %1 = vector.load %arg2[%c0_1, %c0_2] : memref<128x256xf32, #tpu.memory_space<vmem>>, vector<128x256xf32>
    %cst = arith.constant dense<0.000000e+00> : vector<8x256xf32>
    %2 = tpu.matmul %0, %1, %cst {dimension_numbers = #tpu.dot_dimension_numbers<[1], [0], [0], [1], [0, 0, 1, 1], [], []>} : vector<8x128xf32>, vector<128x256xf32>, vector<8x256xf32> -> vector<8x256xf32>
    %c0_3 = arith.constant 0 : index
    %c0_4 = arith.constant 0 : index
    %3 = vector.load %arg3[%c0_3, %c0_4] : memref<1x256xf32, #tpu.memory_space<vmem>>, vector<1x256xf32>
    %4 = vector.broadcast %3 : vector<1x256xf32> to vector<8x256xf32>
    %5 = arith.addf %2, %4 : vector<8x256xf32>
    %cst_5 = arith.constant 0.000000e+00 : f32
    %6 = vector.broadcast %cst_5 : f32 to vector<8x256xf32>
    %7 = arith.maximumf %5, %6 : vector<8x256xf32>
    %c0_6 = arith.constant 0 : index
    %c0_7 = arith.constant 0 : index
    %8 = vector.load %arg4[%c0_6, %c0_7] : memref<256x256xf32, #tpu.memory_space<vmem>>, vector<256x256xf32>
    %cst_8 = arith.constant dense<0.000000e+00> : vector<8x256xf32>
    %9 = tpu.matmul %7, %8, %cst_8 {dimension_numbers = #tpu.dot_dimension_numbers<[1], [0], [0], [1], [0, 0, 1, 1], [], []>} : vector<8x256xf32>, vector<256x256xf32>, vector<8x256xf32> -> vector<8x256xf32>
    %c0_9 = arith.constant 0 : index
    %c0_10 = arith.constant 0 : index
    %10 = vector.load %arg5[%c0_9, %c0_10] : memref<1x256xf32, #tpu.memory_space<vmem>>, vector<1x256xf32>
    %11 = vector.broadcast %10 : vector<1x256xf32> to vector<8x256xf32>
    %12 = arith.addf %9, %11 : vector<8x256xf32>
    %c0_11 = arith.constant 0 : index
    %c0_12 = arith.constant 0 : index
    %13 = vector.load %arg6[%c0_11, %c0_12] : memref<8x256xf32, #tpu.memory_space<vmem>>, vector<8x256xf32>
    tpu.vector_store %arg6[%c0_11, %c0_12], %12 {strides = array<i32>} : memref<8x256xf32, #tpu.memory_space<vmem>>, vector<8x256xf32>,
    return
  }
  func.func @transform_0(%arg0: i32) -> (i32, i32) {
    %c0_i32 = arith.constant 0 : i32
    %c0_i32_0 = arith.constant 0 : i32
    return %arg0, %c0_i32 : i32, i32
  }
  func.func @transform_1(%arg0: i32) -> (i32, i32) {
    %c0_i32 = arith.constant 0 : i32
    %c0_i32_0 = arith.constant 0 : i32
    %c0_i32_1 = arith.constant 0 : i32
    return %c0_i32, %c0_i32_0 : i32, i32
  }
  func.func @transform_2(%arg0: i32) -> (i32, i32) {
    %c0_i32 = arith.constant 0 : i32
    %c0_i32_0 = arith.constant 0 : i32
    %c0_i32_1 = arith.constant 0 : i32
    return %c0_i32, %c0_i32_0 : i32, i32
  }
  func.func @transform_3(%arg0: i32) -> (i32, i32) {
    %c0_i32 = arith.constant 0 : i32
    %c0_i32_0 = arith.constant 0 : i32
    %c0_i32_1 = arith.constant 0 : i32
    return %c0_i32, %c0_i32_0 : i32, i32
  }
  func.func @transform_4(%arg0: i32) -> (i32, i32) {
    %c0_i32 = arith.constant 0 : i32
    %c0_i32_0 = arith.constant 0 : i32
    %c0_i32_1 = arith.constant 0 : i32
    return %c0_i32, %c0_i32_0 : i32, i32
  }
  func.func @transform_5(%arg0: i32) -> (i32, i32) {
    %c0_i32 = arith.constant 0 : i32
    %c0_i32_0 = arith.constant 0 : i32
    return %arg0, %c0_i32 : i32, i32
  }
}

</mosaic_0001>

<bundles_post_ra>
// kernel: _forward_impl.1
= control target key start
LH: loop header
LB: loop body
LE: loop exit
PB: predicated region body
PF: predicated region fallthrough
CT: control target
= control target key end

     0   :  { %10 = vsyncpa [#allocation3], 0  ;;  %s402_s0 = inlined_call_operand.vmem [shape: f32[8,128], index: 0, kind: input, shape index: {}]   ;;  %s403_s1 = inlined_call_operand.hbm [shape: f32[128,256], index: 1, kind: input, shape index: {}]   ;;  %s404_s2 = inlined_call_operand.vmem [shape: f32[1,256], index: 2, kind: input, shape index: {}]   ;;  %s405_s3 = inlined_call_operand.hbm [shape: f32[256,256], index: 3, kind: input, shape index: {}]   ;;  %s406_s4 = inlined_call_operand.vmem [shape: f32[1,256], index: 4, kind: input, shape index: {}]   ;;  %s407_s5 = inlined_call_operand.vmem [shape: f32[8,256], index: 5, kind: output, shape index: {}]  }
   0x1   :  { %s18_s20 = sshll.u32 %s403_s1, 4  ;;  %s19_s20 = int_to_ptr.hbm [resolvable:$true] %s18_s20 }
   0x2   :  { %11 = vsyncpa [#allocation5], 0  ;;  %s347_s21 = smov [#allocation2]   ;;  %s33_s25 = sshll.u32 %s405_s3, 4  ;;  %s34_s25 = int_to_ptr.hbm [resolvable:$true] %s33_s25 }
   0x3   :  { %s20_s22 = sshll.u32 %s347_s21, 4  ;;  %s348_s26 = smov 256   ;;  %s21_s22 = int_to_ptr.vmem [resolvable:$true] %s20_s22 }
   0x4   :  { %s349_s27 = smov 16   ;;  %s350_s28 = smov [#allocation4]  }
   0x5   :  { %26 = dma.hbm_to_vmem [thread:$0]  %s19_s20, 4096, %s21_s22, [#allocation3], %s348_s26, %s348_s26, %s349_s27  }
   0x6   :  { %s35_s29 = sshll.u32 %s350_s28, 4  ;;  %s36_s29 = int_to_ptr.vmem [resolvable:$true] %s35_s29 }
   0x7   :  { %41 = dma.hbm_to_vmem [thread:$0]  %s34_s25, 8192, %s36_s29, [#allocation5], %s348_s26, %s348_s26, %s349_s27  }
   0x8   :  { %343 = dma.done.wait [#allocation3], 4096  }
   0x9   :  { %344 = vsyncadd [#allocation3], 4294963200 }
   0xa   :  { %345 = dma.done.wait [#allocation5], 8192  }
   0xb   :  { %346 = vsyncadd [#allocation5], 4294959104  ;;  %v83_v0 = vld [vmem:[#allocation2 + $0xf0] sm:$0xff]  ;;  %v81_v1 = vld [vmem:[#allocation2 + $0xe0] sm:$0xff] }
   0xc   :  { %v84_v2 = vld [vmem:[#allocation2 + $0xf8] sm:$0xff]  ;;  %91 = vmatpush.msra.mxu0 %v83_v0  ;;  %v82_v3 = vld [vmem:[#allocation2 + $0xe8] sm:$0xff]  ;;  %v79_v4 = vld [vmem:[#allocation2 + $0xd0] sm:$0xff] }
   0xd   :  { %111 = vmatpush.msra.mxu1 %v84_v2  ;;  %v80_v5 = vld [vmem:[#allocation2 + $0xd8] sm:$0xff]  ;;  %v77_v6 = vld [vmem:[#allocation2 + $0xc0] sm:$0xff]  ;;  %v78_v7 = vld [vmem:[#allocation2 + $0xc8] sm:$0xff] }
   0xe   :  { %92 = vmatpush.msra.mxu0 %v81_v1  ;;  %v75_v8 = vld [vmem:[#allocation2 + $0xb0] sm:$0xff]  ;;  %v76_v9 = vld [vmem:[#allocation2 + $0xb8] sm:$0xff]  ;;  %v73_v10 = vld [vmem:[#allocation2 + $0xa0] sm:$0xff] }
   0xf   :  { %112 = vmatpush.msra.mxu1 %v82_v3  ;;  %v74_v11 = vld [vmem:[#allocation2 + $0xa8] sm:$0xff]  ;;  %v71_v12 = vld [vmem:[#allocation2 + $0x90] sm:$0xff]  ;;  %v72_v13 = vld [vmem:[#allocation2 + $0x98] sm:$0xff] }
  0x10   :  { %93 = vmatpush.msra.mxu0 %v79_v4  ;;  %v163_v14 = vld [vmem:[#allocation4 + $0xf0] sm:$0xff]  ;;  %v161_v15 = vld [vmem:[#allocation4 + $0xe0] sm:$0xff]  ;;  %v70_v17 = vld [vmem:[#allocation2 + $0x88] sm:$0xff] }
  0x11   :  { %113 = vmatpush.msra.mxu1 %v80_v5  ;;  %v69_v16 = vld [vmem:[#allocation2 + $0x80] sm:$0xff]  ;;  %203 = vmatpush.msra.mxu2 %v163_v14  ;;  %v195_v18 = vld [vmem:[#allocation4 + $0x1f0] sm:$0xff]  ;;  %v68_v22 = vld [vmem:[#allocation2 + $0x78] sm:$0xff] }
  0x12   :  { %94 = vmatpush.msra.mxu0 %v77_v6  ;;  %v159_v19 = vld [vmem:[#allocation4 + $0xd0] sm:$0xff]  ;;  %v193_v20 = vld [vmem:[#allocation4 + $0x1e0] sm:$0xff]  ;;  %223 = vmatpush.msra.mxu3 %v195_v18  ;;  %v66_v26 = vld [vmem:[#allocation2 + $0x68] sm:$0xff] }
  0x13   :  { %114 = vmatpush.msra.mxu1 %v78_v7  ;;  %v67_v21 = vld [vmem:[#allocation2 + $0x70] sm:$0xff]  ;;  %204 = vmatpush.msra.mxu2 %v161_v15  ;;  %v157_v23 = vld [vmem:[#allocation4 + $0xc0] sm:$0xff]  ;;  %v64_v30 = vld [vmem:[#allocation2 + $0x58] sm:$0xff] }
  0x14   :  { %95 = vmatpush.msra.mxu0 %v75_v8  ;;  %v191_v24 = vld [vmem:[#allocation4 + $0x1d0] sm:$0xff]  ;;  %v65_v25 = vld [vmem:[#allocation2 + $0x60] sm:$0xff]  ;;  %224 = vmatpush.msra.mxu3 %v193_v20  ;;  %v62_v34 = vld [vmem:[#allocation2 + $0x48] sm:$0xff] }
  0x15   :  { %115 = vmatpush.msra.mxu1 %v76_v9  ;;  %205 = vmatpush.msra.mxu2 %v159_v19  ;;  %v155_v27 = vld [vmem:[#allocation4 + $0xb0] sm:$0xff]  ;;  %v189_v28 = vld [vmem:[#allocation4 + $0x1c0] sm:$0xff]  ;;  %v60_v38 = vld [vmem:[#allocation2 + $0x38] sm:$0xff] }
  0x16   :  { %96 = vmatpush.msra.mxu0 %v73_v10  ;;  %v63_v29 = vld [vmem:[#allocation2 + $0x50] sm:$0xff]  ;;  %225 = vmatpush.msra.mxu3 %v191_v24  ;;  %v153_v31 = vld [vmem:[#allocation4 + $0xa0] sm:$0xff]  ;;  %v58_v42 = vld [vmem:[#allocation2 + $0x28] sm:$0xff] }
  0x17   :  { %116 = vmatpush.msra.mxu1 %v74_v11  ;;  %206 = vmatpush.msra.mxu2 %v157_v23  ;;  %v187_v32 = vld [vmem:[#allocation4 + $0x1b0] sm:$0xff]  ;;  %v61_v33 = vld [vmem:[#allocation2 + $0x40] sm:$0xff]  ;;  %v56_v46 = vld [vmem:[#allocation2 + $0x18] sm:$0xff] }
  0x18   :  { %97 = vmatpush.msra.mxu0 %v71_v12  ;;  %226 = vmatpush.msra.mxu3 %v189_v28  ;;  %v151_v35 = vld [vmem:[#allocation4 + $0x90] sm:$0xff]  ;;  %v185_v36 = vld [vmem:[#allocation4 + $0x1a0] sm:$0xff]  ;;  %v54_v50 = vld [vmem:[#allocation2 + $0x8] sm:$0xff] }
  0x19   :  { %117 = vmatpush.msra.mxu1 %v72_v13  ;;  %207 = vmatpush.msra.mxu2 %v155_v27  ;;  %v59_v37 = vld [vmem:[#allocation2 + $0x30] sm:$0xff]  ;;  %v149_v39 = vld [vmem:[#allocation4 + $0x80] sm:$0xff]  ;;  %v164_v52 = vld [vmem:[#allocation4 + $0xf8] sm:$0xff] }
  0x1a   :  { %98 = vmatpush.msra.mxu0 %v69_v16  ;;  %227 = vmatpush.msra.mxu3 %v187_v32  ;;  %v183_v40 = vld [vmem:[#allocation4 + $0x190] sm:$0xff]  ;;  %v57_v41 = vld [vmem:[#allocation2 + $0x20] sm:$0xff]  ;;  %v196_v53 = vld [vmem:[#allocation4 + $0x1f8] sm:$0xff] }
  0x1b   :  { %118 = vmatpush.msra.mxu1 %v70_v17  ;;  %208 = vmatpush.msra.mxu2 %v153_v31  ;;  %v147_v43 = vld [vmem:[#allocation4 + $0x70] sm:$0xff]  ;;  %v181_v44 = vld [vmem:[#allocation4 + $0x180] sm:$0xff]  ;;  %v162_v56 = vld [vmem:[#allocation4 + $0xe8] sm:$0xff] }
  0x1c   :  { %99 = vmatpush.msra.mxu0 %v67_v21  ;;  %228 = vmatpush.msra.mxu3 %v185_v36  ;;  %v55_v45 = vld [vmem:[#allocation2 + $0x10] sm:$0xff]  ;;  %v145_v47 = vld [vmem:[#allocation4 + $0x60] sm:$0xff]  ;;  %v194_v57 = vld [vmem:[#allocation4 + $0x1e8] sm:$0xff] }
  0x1d   :  { %119 = vmatpush.msra.mxu1 %v68_v22  ;;  %209 = vmatpush.msra.mxu2 %v151_v35  ;;  %v179_v48 = vld [vmem:[#allocation4 + $0x170] sm:$0xff]  ;;  %v53_v49 = vld [vmem:[#allocation2] sm:$0xff]  ;;  %v160_v60 = vld [vmem:[#allocation4 + $0xd8] sm:$0xff] }
  0x1e   :  { %100 = vmatpush.msra.mxu0 %v65_v25  ;;  %229 = vmatpush.msra.mxu3 %v183_v40  ;;  %v52_v51 = vld [vmem:[%s402_s0] sm:$0xff]  ;;  %v143_v54 = vld [vmem:[#allocation4 + $0x50] sm:$0xff]  ;;  %v192_v61 = vld [vmem:[#allocation4 + $0x1d8] sm:$0xff] }
  0x1f   :  { %120 = vmatpush.msra.mxu1 %v66_v26  ;;  %210 = vmatpush.msra.mxu2 %v149_v39  ;;  %v177_v55 = vld [vmem:[#allocation4 + $0x160] sm:$0xff]  ;;  %v175_v59 = vld [vmem:[#allocation4 + $0x150] sm:$0xff]  ;;  %v158_v0 = vld [vmem:[#allocation4 + $0xc8] sm:$0xff] }
  0x20   :  { %101 = vmatpush.msra.mxu0 %v63_v29  ;;  %230 = vmatpush.msra.mxu3 %v181_v44  ;;  %v141_v58 = vld [vmem:[#allocation4 + $0x40] sm:$0xff]  ;;  %v139_v62 = vld [vmem:[#allocation4 + $0x30] sm:$0xff]  ;;  %v190_v1 = vld [vmem:[#allocation4 + $0x1c8] sm:$0xff] }
  0x21   :  { %121 = vmatpush.msra.mxu1 %v64_v30  ;;  %211 = vmatpush.msra.mxu2 %v147_v43  ;;  %v173_v63 = vld [vmem:[#allocation4 + $0x140] sm:$0xff]  ;;  %v156_v2 = vld [vmem:[#allocation4 + $0xb8] sm:$0xff]  ;;  %v154_v4 = vld [vmem:[#allocation4 + $0xa8] sm:$0xff] }
  0x22   :  { %102 = vmatpush.msra.mxu0 %v61_v33  ;;  %231 = vmatpush.msra.mxu3 %v179_v48  ;;  %v188_v3 = vld [vmem:[#allocation4 + $0x1b8] sm:$0xff]  ;;  %v186_v5 = vld [vmem:[#allocation4 + $0x1a8] sm:$0xff]  ;;  %v137_v19 = vld [vmem:[#allocation4 + $0x20] sm:$0xff] }
  0x23   :  { %122 = vmatpush.msra.mxu1 %v62_v34  ;;  %212 = vmatpush.msra.mxu2 %v145_v47  ;;  %v152_v6 = vld [vmem:[#allocation4 + $0x98] sm:$0xff]  ;;  %v150_v8 = vld [vmem:[#allocation4 + $0x88] sm:$0xff]  ;;  %v171_v20 = vld [vmem:[#allocation4 + $0x130] sm:$0xff] }
  0x24   :  { %103 = vmatpush.msra.mxu0 %v59_v37  ;;  %232 = vmatpush.msra.mxu3 %v177_v55  ;;  %v184_v7 = vld [vmem:[#allocation4 + $0x198] sm:$0xff]  ;;  %v182_v9 = vld [vmem:[#allocation4 + $0x188] sm:$0xff]  ;;  %v135_v23 = vld [vmem:[#allocation4 + $0x10] sm:$0xff] }
  0x25   :  { %123 = vmatpush.msra.mxu1 %v60_v38  ;;  %213 = vmatpush.msra.mxu2 %v143_v54  ;;  %v148_v10 = vld [vmem:[#allocation4 + $0x78] sm:$0xff]  ;;  %v146_v12 = vld [vmem:[#allocation4 + $0x68] sm:$0xff]  ;;  %v169_v24 = vld [vmem:[#allocation4 + $0x120] sm:$0xff] }
  0x26   :  { %104 = vmatpush.msra.mxu0 %v57_v41  ;;  %233 = vmatpush.msra.mxu3 %v175_v59  ;;  %v180_v11 = vld [vmem:[#allocation4 + $0x178] sm:$0xff]  ;;  %v178_v13 = vld [vmem:[#allocation4 + $0x168] sm:$0xff]  ;;  %v133_v27 = vld [vmem:[#allocation4] sm:$0xff] }
  0x27   :  { %124 = vmatpush.msra.mxu1 %v58_v42  ;;  %214 = vmatpush.msra.mxu2 %v141_v58  ;;  %v144_v14 = vld [vmem:[#allocation4 + $0x58] sm:$0xff]  ;;  %v142_v16 = vld [vmem:[#allocation4 + $0x48] sm:$0xff]  ;;  %v167_v28 = vld [vmem:[#allocation4 + $0x110] sm:$0xff] }
  0x28   :  { %105 = vmatpush.msra.mxu0 %v55_v45  ;;  %234 = vmatpush.msra.mxu3 %v173_v63  ;;  %v176_v15 = vld [vmem:[#allocation4 + $0x158] sm:$0xff]  ;;  %v174_v17 = vld [vmem:[#allocation4 + $0x148] sm:$0xff]  ;;  %v165_v31 = vld [vmem:[#allocation4 + $0x100] sm:$0xff] }
  0x29   :  { %125 = vmatpush.msra.mxu1 %v56_v46  ;;  %215 = vmatpush.msra.mxu2 %v139_v62  ;;  %v140_v18 = vld [vmem:[#allocation4 + $0x38] sm:$0xff]  ;;  %v138_v21 = vld [vmem:[#allocation4 + $0x28] sm:$0xff]  ;;  %v85_v33 = vld [vmem:[%s404_s2] sm:$0x3] }
  0x2a   :  { %106 = vmatpush.msra.mxu0 %v53_v49  ;;  %235 = vmatpush.msra.mxu3 %v171_v20  ;;  %v172_v22 = vld [vmem:[#allocation4 + $0x138] sm:$0xff]  ;;  %v170_v26 = vld [vmem:[#allocation4 + $0x128] sm:$0xff]  ;;  %v87_v34 = vperm.slane %v85_v33, 0  ;;  %v88_v35 = vperm.slane %v85_v33, 1  ;;  %v197_v42 = vld [vmem:[%s406_s4] sm:$0x3] }
  0x2b   :  { %126 = vmatpush.msra.mxu1 %v54_v50  ;;  %107 = vmatmul.f32.vlgmr.msra.gmra.mxu0 %v52_v51  ;;  %v136_v25 = vld [vmem:[#allocation4 + $0x18] sm:$0xff]  ;;  %v134_v29 = vld [vmem:[#allocation4 + $0x8] sm:$0xff]  ;;  %v200_v43 = vperm.slane %v197_v42, 1  ;;  %v199_v48 = vperm.slane %v197_v42, 0 }
  0x2c   :  { %127 = vmatmul.f32.vlgmr.msra.gmra.mxu1 %v52_v51  ;;  %243 = vmatpush.msrb.mxu0 %v164_v52  ;;  %v168_v30 = vld [vmem:[#allocation4 + $0x118] sm:$0xff]  ;;  %v166_v32 = vld [vmem:[#allocation4 + $0x108] sm:$0xff] }
  0x2d   :  { %263 = vmatpush.msrb.mxu1 %v196_v53  ;;  %216 = vmatpush.msra.mxu2 %v137_v19 }
  0x2e   :  { %244 = vmatpush.msrb.mxu0 %v162_v56  ;;  %236 = vmatpush.msra.mxu3 %v169_v24 }
  0x2f   :  { %264 = vmatpush.msrb.mxu1 %v194_v57  ;;  %217 = vmatpush.msra.mxu2 %v135_v23 }
  0x30   :  { %245 = vmatpush.msrb.mxu0 %v160_v60  ;;  %237 = vmatpush.msra.mxu3 %v167_v28 }
  0x31   :  { %265 = vmatpush.msrb.mxu1 %v192_v61  ;;  %218 = vmatpush.msra.mxu2 %v133_v27 }
  0x32   :  { %246 = vmatpush.msrb.mxu0 %v158_v0  ;;  %238 = vmatpush.msra.mxu3 %v165_v31 }
  0x33   :  { %266 = vmatpush.msrb.mxu1 %v190_v1 }
  0x34   :  { %247 = vmatpush.msrb.mxu0 %v156_v2 }
  0x35   :  { %267 = vmatpush.msrb.mxu1 %v188_v3 }
  0x36   :  { %248 = vmatpush.msrb.mxu0 %v154_v4 }
  0x37   :  { %268 = vmatpush.msrb.mxu1 %v186_v5 }
  0x38   :  { %249 = vmatpush.msrb.mxu0 %v152_v6 }
  0x39   :  { %269 = vmatpush.msrb.mxu1 %v184_v7 }
  0x3a   :  { %250 = vmatpush.msrb.mxu0 %v150_v8 }
  0x3b   :  { %270 = vmatpush.msrb.mxu1 %v182_v9 }
  0x3c   :  { %251 = vmatpush.msrb.mxu0 %v148_v10 }
  0x3d   :  { %271 = vmatpush.msrb.mxu1 %v180_v11 }
  0x3e   :  { %252 = vmatpush.msrb.mxu0 %v146_v12 }
  0x3f   :  { %272 = vmatpush.msrb.mxu1 %v178_v13 }
  0x40   :  { %253 = vmatpush.msrb.mxu0 %v144_v14 }
  0x41   :  { %273 = vmatpush.msrb.mxu1 %v176_v15 }
  0x42   :  { %254 = vmatpush.msrb.mxu0 %v142_v16 }
  0x43   :  { %274 = vmatpush.msrb.mxu1 %v174_v17 }
  0x44   :  { %255 = vmatpush.msrb.mxu0 %v140_v18 }
  0x45   :  { %275 = vmatpush.msrb.mxu1 %v172_v22 }
  0x46   :  { %256 = vmatpush.msrb.mxu0 %v138_v21 }
  0x47   :  { %276 = vmatpush.msrb.mxu1 %v170_v26 }
  0x48   :  { %257 = vmatpush.msrb.mxu0 %v136_v25 }
  0x49   :  { %277 = vmatpush.msrb.mxu1 %v168_v30 }
  0x4a   :  { %258 = vmatpush.msrb.mxu0 %v134_v29 }
  0x4b   :  { %278 = vmatpush.msrb.mxu1 %v166_v32 }
  0xa8   :  { %v108_v36 = vpop.f32.mrf.mxu0 }
  0xa9   :  { %v128_v37 = vpop.f32.mrf.mxu1  ;;  %v109_v38 = vadd.f32 %v108_v36, %v87_v34 }
  0xaa   :  { %v129_v39 = vadd.f32 %v128_v37, %v88_v35 }
  0xab   :  { %v131_v40 = vmax.f32 %v109_v38, 0.0 }
  0xac   :  { %v132_v41 = vmax.f32 %v129_v39, 0.0 }
  0xad   :  { %219 = vmatmul.f32.vlgmr.msra.gmra.mxu2 %v131_v40  ;;  %259 = vmatmul.f32.vlgmr.msrb.gmra.mxu0 %v131_v40 }
  0xae   :  { %239 = vmatmul.f32.vlgmr.msra.gmra.mxu3 %v132_v41  ;;  %279 = vmatmul.f32.vlgmr.msrb.gmra.mxu1 %v132_v41 }
 0x12a   :  { %v260_v44 = vpop.f32.mrf.mxu0 }
 0x12b   :  { %v261_v45 = vadd.f32 %v260_v44, %v200_v43  ;;  %v280_v46 = vpop.f32.mrf.mxu1 }
 0x12d   :  { %v281_v47 = vadd.f32 %v280_v46, %v261_v45 }
 0x12f   :  { %284 = vst [vmem:[%s407_s5 + $0x8] sm:$0xff] %v281_v47 }
 0x130   :  { %v220_v49 = vpop.f32.mrf.mxu2 }
 0x131   :  { %v221_v50 = vadd.f32 %v220_v49, %v199_v48  ;;  %v240_v51 = vpop.f32.mrf.mxu3 }
 0x133   :  { %v241_v52 = vadd.f32 %v240_v51, %v221_v50 }
 0x135   :  { %283 = vst [vmem:[%s407_s5] sm:$0xff] %v241_v52 }
 0x136   :  { %289 = vsyncpa [#allocation3], 1 }
 0x137   :  { %290 = vsyncpa [#allocation5], 1 }

// kernel: _forward_impl.1
= control target key start
LH: loop header
LB: loop body
LE: loop exit
PB: predicated region body
PF: predicated region fallthrough
CT: control target
= control target key end

     0   :  { %10 = vsyncpa [#allocation3], 0  ;;  %s402_s0 = inlined_call_operand.vmem [shape: f32[8,128], index: 0, kind: input, shape index: {}]   ;;  %s403_s1 = inlined_call_operand.hbm [shape: f32[128,256], index: 1, kind: input, shape index: {}]   ;;  %s404_s2 = inlined_call_operand.vmem [shape: f32[1,256], index: 2, kind: input, shape index: {}]   ;;  %s405_s3 = inlined_call_operand.hbm [shape: f32[256,256], index: 3, kind: input, shape index: {}]   ;;  %s406_s4 = inlined_call_operand.vmem [shape: f32[1,256], index: 4, kind: input, shape index: {}]   ;;  %s407_s5 = inlined_call_operand.vmem [shape: f32[8,256], index: 5, kind: output, shape index: {}]  }
   0x1   :  { %s18_s20 = sshll.u32 %s403_s1, 4  ;;  %s19_s20 = int_to_ptr.hbm [resolvable:$true] %s18_s20 }
   0x2   :  { %11 = vsyncpa [#allocation5], 0  ;;  %s347_s21 = smov [#allocation2]   ;;  %s33_s25 = sshll.u32 %s405_s3, 4  ;;  %s34_s25 = int_to_ptr.hbm [resolvable:$true] %s33_s25 }
   0x3   :  { %s20_s22 = sshll.u32 %s347_s21, 4  ;;  %s348_s26 = smov 256   ;;  %s21_s22 = int_to_ptr.vmem [resolvable:$true] %s20_s22 }
   0x4   :  { %s349_s27 = smov 16   ;;  %s350_s28 = smov [#allocation4]  }
   0x5   :  { %26 = dma.hbm_to_vmem [thread:$0]  %s19_s20, 4096, %s21_s22, [#allocation3], %s348_s26, %s348_s26, %s349_s27  }
   0x6   :  { %s35_s29 = sshll.u32 %s350_s28, 4  ;;  %s36_s29 = int_to_ptr.vmem [resolvable:$true] %s35_s29 }
   0x7   :  { %41 = dma.hbm_to_vmem [thread:$0]  %s34_s25, 8192, %s36_s29, [#allocation5], %s348_s26, %s348_s26, %s349_s27  }
   0x8   :  { %343 = dma.done.wait [#allocation3], 4096  }
   0x9   :  { %344 = vsyncadd [#allocation3], 4294963200 }
   0xa   :  { %345 = dma.done.wait [#allocation5], 8192  }
   0xb   :  { %346 = vsyncadd [#allocation5], 4294959104  ;;  %v83_v0 = vld [vmem:[#allocation2 + $0xf0] sm:$0xff]  ;;  %v81_v1 = vld [vmem:[#allocation2 + $0xe0] sm:$0xff] }
   0xc   :  { %v84_v2 = vld [vmem:[#allocation2 + $0xf8] sm:$0xff]  ;;  %91 = vmatpush.msra.mxu0 %v83_v0  ;;  %v82_v3 = vld [vmem:[#allocation2 + $0xe8] sm:$0xff]  ;;  %v79_v4 = vld [vmem:[#allocation2 + $0xd0] sm:$0xff] }
   0xd   :  { %111 = vmatpush.msra.mxu1 %v84_v2  ;;  %v80_v5 = vld [vmem:[#allocation2 + $0xd8] sm:$0xff]  ;;  %v77_v6 = vld [vmem:[#allocation2 + $0xc0] sm:$0xff]  ;;  %v78_v7 = vld [vmem:[#allocation2 + $0xc8] sm:$0xff] }
   0xe   :  { %92 = vmatpush.msra.mxu0 %v81_v1  ;;  %v75_v8 = vld [vmem:[#allocation2 + $0xb0] sm:$0xff]  ;;  %v76_v9 = vld [vmem:[#allocation2 + $0xb8] sm:$0xff]  ;;  %v73_v10 = vld [vmem:[#allocation2 + $0xa0] sm:$0xff] }
   0xf   :  { %112 = vmatpush.msra.mxu1 %v82_v3  ;;  %v74_v11 = vld [vmem:[#allocation2 + $0xa8] sm:$0xff]  ;;  %v71_v12 = vld [vmem:[#allocation2 + $0x90] sm:$0xff]  ;;  %v72_v13 = vld [vmem:[#allocation2 + $0x98] sm:$0xff] }
  0x10   :  { %93 = vmatpush.msra.mxu0 %v79_v4  ;;  %v163_v14 = vld [vmem:[#allocation4 + $0xf0] sm:$0xff]  ;;  %v161_v15 = vld [vmem:[#allocation4 + $0xe0] sm:$0xff]  ;;  %v70_v17 = vld [vmem:[#allocation2 + $0x88] sm:$0xff] }
  0x11   :  { %113 = vmatpush.msra.mxu1 %v80_v5  ;;  %v69_v16 = vld [vmem:[#allocation2 + $0x80] sm:$0xff]  ;;  %203 = vmatpush.msra.mxu2 %v163_v14  ;;  %v195_v18 = vld [vmem:[#allocation4 + $0x1f0] sm:$0xff]  ;;  %v68_v22 = vld [vmem:[#allocation2 + $0x78] sm:$0xff] }
  0x12   :  { %94 = vmatpush.msra.mxu0 %v77_v6  ;;  %v159_v19 = vld [vmem:[#allocation4 + $0xd0] sm:$0xff]  ;;  %v193_v20 = vld [vmem:[#allocation4 + $0x1e0] sm:$0xff]  ;;  %223 = vmatpush.msra.mxu3 %v195_v18  ;;  %v66_v26 = vld [vmem:[#allocation2 + $0x68] sm:$0xff] }
  0x13   :  { %114 = vmatpush.msra.mxu1 %v78_v7  ;;  %v67_v21 = vld [vmem:[#allocation2 + $0x70] sm:$0xff]  ;;  %204 = vmatpush.msra.mxu2 %v161_v15  ;;  %v157_v23 = vld [vmem:[#allocation4 + $0xc0] sm:$0xff]  ;;  %v64_v30 = vld [vmem:[#allocation2 + $0x58] sm:$0xff] }
  0x14   :  { %95 = vmatpush.msra.mxu0 %v75_v8  ;;  %v191_v24 = vld [vmem:[#allocation4 + $0x1d0] sm:$0xff]  ;;  %v65_v25 = vld [vmem:[#allocation2 + $0x60] sm:$0xff]  ;;  %224 = vmatpush.msra.mxu3 %v193_v20  ;;  %v62_v34 = vld [vmem:[#allocation2 + $0x48] sm:$0xff] }
  0x15   :  { %115 = vmatpush.msra.mxu1 %v76_v9  ;;  %205 = vmatpush.msra.mxu2 %v159_v19  ;;  %v155_v27 = vld [vmem:[#allocation4 + $0xb0] sm:$0xff]  ;;  %v189_v28 = vld [vmem:[#allocation4 + $0x1c0] sm:$0xff]  ;;  %v60_v38 = vld [vmem:[#allocation2 + $0x38] sm:$0xff] }
  0x16   :  { %96 = vmatpush.msra.mxu0 %v73_v10  ;;  %v63_v29 = vld [vmem:[#allocation2 + $0x50] sm:$0xff]  ;;  %225 = vmatpush.msra.mxu3 %v191_v24  ;;  %v153_v31 = vld [vmem:[#allocation4 + $0xa0] sm:$0xff]  ;;  %v58_v42 = vld [vmem:[#allocation2 + $0x28] sm:$0xff] }
  0x17   :  { %116 = vmatpush.msra.mxu1 %v74_v11  ;;  %206 = vmatpush.msra.mxu2 %v157_v23  ;;  %v187_v32 = vld [vmem:[#allocation4 + $0x1b0] sm:$0xff]  ;;  %v61_v33 = vld [vmem:[#allocation2 + $0x40] sm:$0xff]  ;;  %v56_v46 = vld [vmem:[#allocation2 + $0x18] sm:$0xff] }
  0x18   :  { %97 = vmatpush.msra.mxu0 %v71_v12  ;;  %226 = vmatpush.msra.mxu3 %v189_v28  ;;  %v151_v35 = vld [vmem:[#allocation4 + $0x90] sm:$0xff]  ;;  %v185_v36 = vld [vmem:[#allocation4 + $0x1a0] sm:$0xff]  ;;  %v54_v50 = vld [vmem:[#allocation2 + $0x8] sm:$0xff] }
  0x19   :  { %117 = vmatpush.msra.mxu1 %v72_v13  ;;  %207 = vmatpush.msra.mxu2 %v155_v27  ;;  %v59_v37 = vld [vmem:[#allocation2 + $0x30] sm:$0xff]  ;;  %v149_v39 = vld [vmem:[#allocation4 + $0x80] sm:$0xff]  ;;  %v164_v52 = vld [vmem:[#allocation4 + $0xf8] sm:$0xff] }
  0x1a   :  { %98 = vmatpush.msra.mxu0 %v69_v16  ;;  %227 = vmatpush.msra.mxu3 %v187_v32  ;;  %v183_v40 = vld [vmem:[#allocation4 + $0x190] sm:$0xff]  ;;  %v57_v41 = vld [vmem:[#allocation2 + $0x20] sm:$0xff]  ;;  %v196_v53 = vld [vmem:[#allocation4 + $0x1f8] sm:$0xff] }
  0x1b   :  { %118 = vmatpush.msra.mxu1 %v70_v17  ;;  %208 = vmatpush.msra.mxu2 %v153_v31  ;;  %v147_v43 = vld [vmem:[#allocation4 + $0x70] sm:$0xff]  ;;  %v181_v44 = vld [vmem:[#allocation4 + $0x180] sm:$0xff]  ;;  %v162_v56 = vld [vmem:[#allocation4 + $0xe8] sm:$0xff] }
  0x1c   :  { %99 = vmatpush.msra.mxu0 %v67_v21  ;;  %228 = vmatpush.msra.mxu3 %v185_v36  ;;  %v55_v45 = vld [vmem:[#allocation2 + $0x10] sm:$0xff]  ;;  %v145_v47 = vld [vmem:[#allocation4 + $0x60] sm:$0xff]  ;;  %v194_v57 = vld [vmem:[#allocation4 + $0x1e8] sm:$0xff] }
  0x1d   :  { %119 = vmatpush.msra.mxu1 %v68_v22  ;;  %209 = vmatpush.msra.mxu2 %v151_v35  ;;  %v179_v48 = vld [vmem:[#allocation4 + $0x170] sm:$0xff]  ;;  %v53_v49 = vld [vmem:[#allocation2] sm:$0xff]  ;;  %v160_v60 = vld [vmem:[#allocation4 + $0xd8] sm:$0xff] }
  0x1e   :  { %100 = vmatpush.msra.mxu0 %v65_v25  ;;  %229 = vmatpush.msra.mxu3 %v183_v40  ;;  %v52_v51 = vld [vmem:[%s402_s0] sm:$0xff]  ;;  %v143_v54 = vld [vmem:[#allocation4 + $0x50] sm:$0xff]  ;;  %v192_v61 = vld [vmem:[#allocation4 + $0x1d8] sm:$0xff] }
  0x1f   :  { %120 = vmatpush.msra.mxu1 %v66_v26  ;;  %210 = vmatpush.msra.mxu2 %v149_v39  ;;  %v177_v55 = vld [vmem:[#allocation4 + $0x160] sm:$0xff]  ;;  %v175_v59 = vld [vmem:[#allocation4 + $0x150] sm:$0xff]  ;;  %v158_v0 = vld [vmem:[#allocation4 + $0xc8] sm:$0xff] }
  0x20   :  { %101 = vmatpush.msra.mxu0 %v63_v29  ;;  %230 = vmatpush.msra.mxu3 %v181_v44  ;;  %v141_v58 = vld [vmem:[#allocation4 + $0x40] sm:$0xff]  ;;  %v139_v62 = vld [vmem:[#allocation4 + $0x30] sm:$0xff]  ;;  %v190_v1 = vld [vmem:[#allocation4 + $0x1c8] sm:$0xff] }
  0x21   :  { %121 = vmatpush.msra.mxu1 %v64_v30  ;;  %211 = vmatpush.msra.mxu2 %v147_v43  ;;  %v173_v63 = vld [vmem:[#allocation4 + $0x140] sm:$0xff]  ;;  %v156_v2 = vld [vmem:[#allocation4 + $0xb8] sm:$0xff]  ;;  %v154_v4 = vld [vmem:[#allocation4 + $0xa8] sm:$0xff] }
  0x22   :  { %102 = vmatpush.msra.mxu0 %v61_v33  ;;  %231 = vmatpush.msra.mxu3 %v179_v48  ;;  %v188_v3 = vld [vmem:[#allocation4 + $0x1b8] sm:$0xff]  ;;  %v186_v5 = vld [vmem:[#allocation4 + $0x1a8] sm:$0xff]  ;;  %v137_v19 = vld [vmem:[#allocation4 + $0x20] sm:$0xff] }
  0x23   :  { %122 = vmatpush.msra.mxu1 %v62_v34  ;;  %212 = vmatpush.msra.mxu2 %v145_v47  ;;  %v152_v6 = vld [vmem:[#allocation4 + $0x98] sm:$0xff]  ;;  %v150_v8 = vld [vmem:[#allocation4 + $0x88] sm:$0xff]  ;;  %v171_v20 = vld [vmem:[#allocation4 + $0x130] sm:$0xff] }
  0x24   :  { %103 = vmatpush.msra.mxu0 %v59_v37  ;;  %232 = vmatpush.msra.mxu3 %v177_v55  ;;  %v184_v7 = vld [vmem:[#allocation4 + $0x198] sm:$0xff]  ;;  %v182_v9 = vld [vmem:[#allocation4 + $0x188] sm:$0xff]  ;;  %v135_v23 = vld [vmem:[#allocation4 + $0x10] sm:$0xff] }
  0x25   :  { %123 = vmatpush.msra.mxu1 %v60_v38  ;;  %213 = vmatpush.msra.mxu2 %v143_v54  ;;  %v148_v10 = vld [vmem:[#allocation4 + $0x78] sm:$0xff]  ;;  %v146_v12 = vld [vmem:[#allocation4 + $0x68] sm:$0xff]  ;;  %v169_v24 = vld [vmem:[#allocation4 + $0x120] sm:$0xff] }
  0x26   :  { %104 = vmatpush.msra.mxu0 %v57_v41  ;;  %233 = vmatpush.msra.mxu3 %v175_v59  ;;  %v180_v11 = vld [vmem:[#allocation4 + $0x178] sm:$0xff]  ;;  %v178_v13 = vld [vmem:[#allocation4 + $0x168] sm:$0xff]  ;;  %v133_v27 = vld [vmem:[#allocation4] sm:$0xff] }
  0x27   :  { %124 = vmatpush.msra.mxu1 %v58_v42  ;;  %214 = vmatpush.msra.mxu2 %v141_v58  ;;  %v144_v14 = vld [vmem:[#allocation4 + $0x58] sm:$0xff]  ;;  %v142_v16 = vld [vmem:[#allocation4 + $0x48] sm:$0xff]  ;;  %v167_v28 = vld [vmem:[#allocation4 + $0x110] sm:$0xff] }
  0x28   :  { %105 = vmatpush.msra.mxu0 %v55_v45  ;;  %234 = vmatpush.msra.mxu3 %v173_v63  ;;  %v176_v15 = vld [vmem:[#allocation4 + $0x158] sm:$0xff]  ;;  %v174_v17 = vld [vmem:[#allocation4 + $0x148] sm:$0xff]  ;;  %v165_v31 = vld [vmem:[#allocation4 + $0x100] sm:$0xff] }
  0x29   :  { %125 = vmatpush.msra.mxu1 %v56_v46  ;;  %215 = vmatpush.msra.mxu2 %v139_v62  ;;  %v140_v18 = vld [vmem:[#allocation4 + $0x38] sm:$0xff]  ;;  %v138_v21 = vld [vmem:[#allocation4 + $0x28] sm:$0xff]  ;;  %v85_v33 = vld [vmem:[%s404_s2] sm:$0x3] }
  0x2a   :  { %106 = vmatpush.msra.mxu0 %v53_v49  ;;  %235 = vmatpush.msra.mxu3 %v171_v20  ;;  %v172_v22 = vld [vmem:[#allocation4 + $0x138] sm:$0xff]  ;;  %v170_v26 = vld [vmem:[#allocation4 + $0x128] sm:$0xff]  ;;  %v87_v34 = vperm.slane %v85_v33, 0  ;;  %v88_v35 = vperm.slane %v85_v33, 1  ;;  %v197_v42 = vld [vmem:[%s406_s4] sm:$0x3] }
  0x2b   :  { %126 = vmatpush.msra.mxu1 %v54_v50  ;;  %107 = vmatmul.f32.vlgmr.msra.gmra.mxu0 %v52_v51  ;;  %v136_v25 = vld [vmem:[#allocation4 + $0x18] sm:$0xff]  ;;  %v134_v29 = vld [vmem:[#allocation4 + $0x8] sm:$0xff]  ;;  %v200_v43 = vperm.slane %v197_v42, 1  ;;  %v199_v48 = vperm.slane %v197_v42, 0 }
  0x2c   :  { %127 = vmatmul.f32.vlgmr.msra.gmra.mxu1 %v52_v51  ;;  %243 = vmatpush.msrb.mxu0 %v164_v52  ;;  %v168_v30 = vld [vmem:[#allocation4 + $0x118] sm:$0xff]  ;;  %v166_v32 = vld [vmem:[#allocation4 + $0x108] sm:$0xff] }
  0x2d   :  { %263 = vmatpush.msrb.mxu1 %v196_v53  ;;  %216 = vmatpush.msra.mxu2 %v137_v19 }
  0x2e   :  { %244 = vmatpush.msrb.mxu0 %v162_v56  ;;  %236 = vmatpush.msra.mxu3 %v169_v24 }
  0x2f   :  { %264 = vmatpush.msrb.mxu1 %v194_v57  ;;  %217 = vmatpush.msra.mxu2 %v135_v23 }
  0x30   :  { %245 = vmatpush.msrb.mxu0 %v160_v60  ;;  %237 = vmatpush.msra.mxu3 %v167_v28 }
  0x31   :  { %265 = vmatpush.msrb.mxu1 %v192_v61  ;;  %218 = vmatpush.msra.mxu2 %v133_v27 }
  0x32   :  { %246 = vmatpush.msrb.mxu0 %v158_v0  ;;  %238 = vmatpush.msra.mxu3 %v165_v31 }
  0x33   :  { %266 = vmatpush.msrb.mxu1 %v190_v1 }
  0x34   :  { %247 = vmatpush.msrb.mxu0 %v156_v2 }
  0x35   :  { %267 = vmatpush.msrb.mxu1 %v188_v3 }
  0x36   :  { %248 = vmatpush.msrb.mxu0 %v154_v4 }
  0x37   :  { %268 = vmatpush.msrb.mxu1 %v186_v5 }
  0x38   :  { %249 = vmatpush.msrb.mxu0 %v152_v6 }
  0x39   :  { %269 = vmatpush.msrb.mxu1 %v184_v7 }
  0x3a   :  { %250 = vmatpush.msrb.mxu0 %v150_v8 }
  0x3b   :  { %270 = vmatpush.msrb.mxu1 %v182_v9 }
  0x3c   :  { %251 = vmatpush.msrb.mxu0 %v148_v10 }
  0x3d   :  { %271 = vmatpush.msrb.mxu1 %v180_v11 }
  0x3e   :  { %252 = vmatpush.msrb.mxu0 %v146_v12 }
  0x3f   :  { %272 = vmatpush.msrb.mxu1 %v178_v13 }
  0x40   :  { %253 = vmatpush.msrb.mxu0 %v144_v14 }
  0x41   :  { %273 = vmatpush.msrb.mxu1 %v176_v15 }
  0x42   :  { %254 = vmatpush.msrb.mxu0 %v142_v16 }
  0x43   :  { %274 = vmatpush.msrb.mxu1 %v174_v17 }
  0x44   :  { %255 = vmatpush.msrb.mxu0 %v140_v18 }
  0x45   :  { %275 = vmatpush.msrb.mxu1 %v172_v22 }
  0x46   :  { %256 = vmatpush.msrb.mxu0 %v138_v21 }
  0x47   :  { %276 = vmatpush.msrb.mxu1 %v170_v26 }
  0x48   :  { %257 = vmatpush.msrb.mxu0 %v136_v25 }
  0x49   :  { %277 = vmatpush.msrb.mxu1 %v168_v30 }
  0x4a   :  { %258 = vmatpush.msrb.mxu0 %v134_v29 }
  0x4b   :  { %278 = vmatpush.msrb.mxu1 %v166_v32 }
  0xa8   :  { %v108_v36 = vpop.f32.mrf.mxu0 }
  0xa9   :  { %v128_v37 = vpop.f32.mrf.mxu1  ;;  %v109_v38 = vadd.f32 %v108_v36, %v87_v34 }
  0xaa   :  { %v129_v39 = vadd.f32 %v128_v37, %v88_v35 }
  0xab   :  { %v131_v40 = vmax.f32 %v109_v38, 0.0 }
  0xac   :  { %v132_v41 = vmax.f32 %v129_v39, 0.0 }
  0xad   :  { %219 = vmatmul.f32.vlgmr.msra.gmra.mxu2 %v131_v40  ;;  %259 = vmatmul.f32.vlgmr.msrb.gmra.mxu0 %v131_v40 }
  0xae   :  { %239 = vmatmul.f32.vlgmr.msra.gmra.mxu3 %v132_v41  ;;  %279 = vmatmul.f32.vlgmr.msrb.gmra.mxu1 %v132_v41 }
 0x12a   :  { %v260_v44 = vpop.f32.mrf.mxu0 }
 0x12b   :  { %v261_v45 = vadd.f32 %v260_v44, %v200_v43  ;;  %v280_v46 = vpop.f32.mrf.mxu1 }
 0x12d   :  { %v281_v47 = vadd.f32 %v280_v46, %v261_v45 }
 0x12f   :  { %284 = vst [vmem:[%s407_s5 + $0x8] sm:$0xff] %v281_v47 }
 0x130   :  { %v220_v49 = vpop.f32.mrf.mxu2 }
 0x131   :  { %v221_v50 = vadd.f32 %v220_v49, %v199_v48  ;;  %v240_v51 = vpop.f32.mrf.mxu3 }
 0x133   :  { %v241_v52 = vadd.f32 %v240_v51, %v221_v50 }
 0x135   :  { %283 = vst [vmem:[%s407_s5] sm:$0xff] %v241_v52 }
 0x136   :  { %289 = vsyncpa [#allocation3], 1 }
 0x137   :  { %290 = vsyncpa [#allocation5], 1 }

</bundles_post_ra>
